<compile_context>
chip_gen: v7x
topology: tpu7x:2x2x1
jax: 0.10.0
libtpu: 0.0.40
codegen_flags: <defaults>
</compile_context>

<pallas_src>
import functools
import math

import jax
import jax.numpy as jnp
from jax.experimental import pallas as pl
from jax.experimental.pallas import tpu as pltpu


# ----------------------------------------------------------------------------
# Tiled matmul kernel (fused QKV projection and output projection)
# ----------------------------------------------------------------------------
def _matmul_kernel(x_ref, w_ref, o_ref, acc_ref):
    @pl.when(pl.program_id(2) == 0)
    def _init():
        acc_ref[...] = jnp.zeros_like(acc_ref)

    acc_ref[...] += jnp.dot(x_ref[...], w_ref[...],
                            preferred_element_type=jnp.float32)

    @pl.when(pl.program_id(2) == pl.num_programs(2) - 1)
    def _store():
        o_ref[...] = acc_ref[...].astype(o_ref.dtype)


def _matmul(x, w, *, tm=256, tn=256, tk=256):
    """x: (M, K) @ w: (K, N) -> (M, N), tiled, f32 accumulation."""
    M, K = x.shape
    K2, N = w.shape
    assert K == K2
    tm, tn, tk = min(tm, M), min(tn, N), min(tk, K)
    assert M % tm == 0 and N % tn == 0 and K % tk == 0, "pad to tile multiples"
    grid = (M // tm, N // tn, K // tk)
    return pl.pallas_call(
        _matmul_kernel,
        out_shape=jax.ShapeDtypeStruct((M, N), jnp.float32),
        grid_spec=pltpu.PrefetchScalarGridSpec(
            num_scalar_prefetch=0,
            grid=grid,
            in_specs=[
                pl.BlockSpec((tm, tk), lambda i, j, k: (i, k)),
                pl.BlockSpec((tk, tn), lambda i, j, k: (k, j)),
            ],
            out_specs=pl.BlockSpec((tm, tn), lambda i, j, k: (i, j)),
            scratch_shapes=[pltpu.VMEM((tm, tn), jnp.float32)],
        ),
        compiler_params=pltpu.CompilerParams(
            dimension_semantics=("parallel", "parallel", "arbitrary")),
    )(x, w)


# ----------------------------------------------------------------------------
# Attention kernel: all heads of one batch element per grid step.
# q_ref: (1, H, S, Dh); k_ref/v_ref: (1, Hkv, T, Dh); o_ref: (1, S, H*Dh)
# ----------------------------------------------------------------------------
def _attn_kernel(q_ref, k_ref, v_ref, o_ref, *, scale, repeats):
    n_heads = q_ref.shape[1]
    head_dim = q_ref.shape[3]
    for h in range(n_heads):                      # static loop, single grid step
        q = q_ref[0, h]                           # (S, Dh)
        k = k_ref[0, h // repeats]                # (T, Dh)  GQA: no repeat copy
        v = v_ref[0, h // repeats]                # (T, Dh)
        s = jnp.dot(q, k.T, preferred_element_type=jnp.float32) * scale  # (S, T)
        s = s - jnp.max(s, axis=-1, keepdims=True)
        p = jnp.exp(s)
        # exact reciprocal to stay within tight f32 tolerance of the reference;
        # production: approx=True (EUP) or fold 1/l into the final scale.
        p = p * pl.reciprocal(jnp.sum(p, axis=-1, keepdims=True), approx=False)
        o = jnp.dot(p, v, preferred_element_type=jnp.float32)            # (S, Dh)
        # write into the lane-dense per-batch (S, H*Dh) slab
        o_ref[0, :, h * head_dim:(h + 1) * head_dim] = o


def _attention(q, k, v):
    """q: (B, H, S, Dh); k, v: (B, Hkv, T, Dh) -> (B, S, H*Dh) (heads concat)."""
    B, H, S, Dh = q.shape
    Hkv, T = k.shape[1], k.shape[2]
    repeats = H // Hkv
    scale = 1.0 / math.sqrt(Dh)
    return pl.pallas_call(
        functools.partial(_attn_kernel, scale=scale, repeats=repeats),
        out_shape=jax.ShapeDtypeStruct((B, S, H * Dh), jnp.float32),
        grid=(B,),
        in_specs=[
            pl.BlockSpec((1, H, S, Dh), lambda b: (b, 0, 0, 0)),
            pl.BlockSpec((1, Hkv, T, Dh), lambda b: (b, 0, 0, 0)),
            pl.BlockSpec((1, Hkv, T, Dh), lambda b: (b, 0, 0, 0)),
        ],
        out_specs=pl.BlockSpec((1, S, H * Dh), lambda b: (b, 0, 0)),
        compiler_params=pltpu.CompilerParams(
            dimension_semantics=("parallel",)),
    )(q, k, v)


# ----------------------------------------------------------------------------
# Plain-JAX glue (reshapes, RoPE, cache) matching the PyTorch module semantics
# ----------------------------------------------------------------------------
def _split_heads(x, n_heads):
    b, s, d = x.shape
    return jnp.transpose(x.reshape(b, s, n_heads, d // n_heads), (0, 2, 1, 3))


def _rope_angles(model_dim, seq_limit, scaling_factor=10000.0):
    freqs = jnp.exp(-jnp.arange(0, model_dim, 2, dtype=jnp.float32)
                    * math.log(scaling_factor) / model_dim)   # (model_dim//2,)
    return jnp.outer(jnp.arange(seq_limit, dtype=jnp.float32), freqs)


def _apply_rope(x, angles, start_position):
    # x: (B, H, S, D); interleaved pairs (even=real, odd=imag), complex multiply
    b, h, s, d = x.shape
    ang = angles[start_position:start_position + s, : d // 2]   # (S, D//2)
    cos, sin = jnp.cos(ang), jnp.sin(ang)
    xr = x.reshape(b, h, s, d // 2, 2)
    xe, xo = xr[..., 0], xr[..., 1]
    oe = xe * cos - xo * sin
    oo = xe * sin + xo * cos
    return jnp.stack([oe, oo], axis=-1).reshape(b, h, s, d)


def _cache_update(cache, x, start_position):
    # cache: (B_lim, Hkv, S_lim, D); x: (B, Hkv, s, D) -> (B, Hkv, T, D), cache
    b, _, s, _ = x.shape
    cache = jax.lax.dynamic_update_slice(cache, x, (0, 0, start_position, 0))
    return cache[:b, :, :start_position + s], cache


# ----------------------------------------------------------------------------
# Attention module (forward only)
# ----------------------------------------------------------------------------
class AttentionPallas:
    def __init__(self, model_dimension, number_of_heads, number_of_kv_heads,
                 batch_size_limit, sequence_lenght_limit, key):
        self.model_dimension = model_dimension
        self.heads_dimension = model_dimension // number_of_heads
        self.number_of_heads = number_of_heads
        self.number_of_kv_heads = number_of_kv_heads
        self.repeats = number_of_heads // number_of_kv_heads

        kq, kk, kv, ko = jax.random.split(key, 4)
        self.dq = self.heads_dimension * number_of_heads
        self.dkv = self.heads_dimension * number_of_kv_heads
        bound = 1.0 / math.sqrt(model_dimension)
        # PyTorch Linear weights are (out, in); we store transposed (in, out).
        self.wq = jax.random.uniform(kq, (model_dimension, self.dq),
                                     jnp.float32, -bound, bound)
        self.wk = jax.random.uniform(kk, (model_dimension, self.dkv),
                                     jnp.float32, -bound, bound)
        self.wv = jax.random.uniform(kv, (model_dimension, self.dkv),
                                     jnp.float32, -bound, bound)
        self.wo = jax.random.uniform(ko, (self.dq, model_dimension),
                                     jnp.float32, -bound, bound)
        # Fused QKV weight: a single projection matmul instead of three.
        self.w_qkv = jnp.concatenate([self.wq, self.wk, self.wv], axis=1)

        # KV cache stored head-major so no transposes are needed per call.
        self.k_cache = jnp.zeros((batch_size_limit, number_of_kv_heads,
                                  sequence_lenght_limit, self.heads_dimension),
                                 jnp.float32)
        self.v_cache = jnp.zeros_like(self.k_cache)
        self.angles = _rope_angles(model_dimension, sequence_lenght_limit)

    def __call__(self, sequence, start_position, mask=None):
        # TODO(synk): additive/causal mask not plumbed into the Pallas kernel
        # (module is exercised with mask=None, matching SDPA's default).
        assert mask is None, "mask not supported in the Pallas attention kernel"
        b, s, d = sequence.shape
        x2d = sequence.reshape(b * s, d)

        # One fused q|k|v projection; split by cheap slicing.
        qkv = _matmul(x2d, self.w_qkv)                       # (B*S, dq+2*dkv)
        q = qkv[:, : self.dq].reshape(b, s, self.dq)
        k = qkv[:, self.dq: self.dq + self.dkv].reshape(b, s, self.dkv)
        v = qkv[:, self.dq + self.dkv:].reshape(b, s, self.dkv)

        q = _split_heads(q, self.number_of_heads)            # (B, H, S, Dh)
        k = _split_heads(k, self.number_of_kv_heads)         # (B, Hkv, S, Dh)
        v = _split_heads(v, self.number_of_kv_heads)

        q = _apply_rope(q, self.angles, start_position)
        k = _apply_rope(k, self.angles, start_position)

        k, self.k_cache = _cache_update(self.k_cache, k, start_position)
        v, self.v_cache = _cache_update(self.v_cache, v, start_position)

        # GQA handled inside the kernel: no repeat_interleave materialization.
        attn = _attention(q, k, v)                           # (B, S, H*Dh)
        out = _matmul(attn.reshape(b * s, -1), self.wo)      # (B*S, model_dim)
        return out.reshape(b, s, self.model_dimension)


# ----------------------------------------------------------------------------
# Pure-JAX reference for correctness check
# ----------------------------------------------------------------------------
def _reference(mod, sequence, start_position):
    q = sequence @ mod.wq
    k = sequence @ mod.wk
    v = sequence @ mod.wv
    q = _split_heads(q, mod.number_of_heads)
    k = _split_heads(k, mod.number_of_kv_heads)
    v = _split_heads(v, mod.number_of_kv_heads)
    q = _apply_rope(q, mod.angles, start_position)
    k = _apply_rope(k, mod.angles, start_position)
    # start_position == 0, fresh zero cache -> cached kv == current kv
    k = jnp.repeat(k, mod.repeats, axis=1)
    v = jnp.repeat(v, mod.repeats, axis=1)
    scale = 1.0 / math.sqrt(mod.heads_dimension)
    scores = jnp.einsum("bhqd,bhkd->bhqk", q, k) * scale
    p = jax.nn.softmax(scores, axis=-1)
    o = jnp.einsum("bhqk,bhkd->bhqd", p, v)
    b, h, s, dh = o.shape
    o = jnp.transpose(o, (0, 2, 1, 3)).reshape(b, s, h * dh)
    return o @ mod.wo


if __name__ == "__main__":
    model_dimension = 32
    number_of_heads = 4
    number_of_kv_heads = 2
    batch_size_limit = 2
    sequence_lenght_limit = 16
    batch, seq = 2, 8
    start_position = 0

    key = jax.random.PRNGKey(0)
    k_param, k_x = jax.random.split(key)

    attn = AttentionPallas(model_dimension, number_of_heads, number_of_kv_heads,
                           batch_size_limit, sequence_lenght_limit, k_param)
    x = jax.random.normal(k_x, (batch, seq, model_dimension), jnp.float32)

    out = attn(x, start_position)
    out = jax.block_until_ready(out)

    ref = _reference(attn, x, start_position)
    assert out.shape == (batch, seq, model_dimension)
    assert jnp.allclose(out, ref, rtol=2e-4, atol=2e-4), "mismatch vs reference"

    print("KERNEL_OK")
</pallas_src>

<mosaic_0001>
module attributes {stable_mosaic.version = 11 : i64} {
  func.func @_matmul_kernel(%arg0: i32, %arg1: i32, %arg2: i32, %arg3: memref<16x32xf32, #tpu.memory_space<vmem>>, %arg4: memref<32x64xf32, #tpu.memory_space<vmem>>, %arg5: memref<16x64xf32, #tpu.memory_space<vmem>>, %arg6: memref<16x64xf32, #tpu.memory_space<vmem>>) attributes {dimension_semantics = [#tpu.dimension_semantics<parallel>, #tpu.dimension_semantics<parallel>, #tpu.dimension_semantics<arbitrary>], iteration_bounds = array<i64: 1, 1, 1>, scalar_prefetch = 0 : i64, scratch_operands = 1 : i64, tpu.core_type = #tpu.core_type<tc>, window_params = [{transform_indices = @transform_0, window_bounds = array<i64: 16, 32>}, {transform_indices = @transform_1, window_bounds = array<i64: 32, 64>}, {transform_indices = @transform_2, window_bounds = array<i64: 16, 64>}]} {
    %c0_i32 = arith.constant 0 : i32
    %0 = arith.cmpi eq, %arg2, %c0_i32 : i32
    %1 = arith.extui %0 : i1 to i32
    %c0_i32_0 = arith.constant 0 : i32
    %2 = arith.cmpi ne, %1, %c0_i32_0 : i32
    scf.if %2 {
      %cst_10 = arith.constant 0.000000e+00 : f32
      %12 = vector.broadcast %cst_10 : f32 to vector<16x64xf32>
      %c0_11 = arith.constant 0 : index
      %c0_12 = arith.constant 0 : index
      %13 = vector.load %arg6[%c0_11, %c0_12] : memref<16x64xf32, #tpu.memory_space<vmem>>, vector<16x64xf32>
      tpu.vector_store %arg6[%c0_11, %c0_12], %12 {strides = array<i32>} : memref<16x64xf32, #tpu.memory_space<vmem>>, vector<16x64xf32>,
    } else {
    }
    %c0 = arith.constant 0 : index
    %c0_1 = arith.constant 0 : index
    %3 = vector.load %arg6[%c0, %c0_1] : memref<16x64xf32, #tpu.memory_space<vmem>>, vector<16x64xf32>
    %c0_2 = arith.constant 0 : index
    %c0_3 = arith.constant 0 : index
    %4 = vector.load %arg3[%c0_2, %c0_3] : memref<16x32xf32, #tpu.memory_space<vmem>>, vector<16x32xf32>
    %c0_4 = arith.constant 0 : index
    %c0_5 = arith.constant 0 : index
    %5 = vector.load %arg4[%c0_4, %c0_5] : memref<32x64xf32, #tpu.memory_space<vmem>>, vector<32x64xf32>
    %cst = arith.constant dense<0.000000e+00> : vector<16x64xf32>
    %6 = tpu.matmul %4, %5, %cst {dimension_numbers = #tpu.dot_dimension_numbers<[1], [0], [0], [1], [0, 0, 1, 1], [], []>} : vector<16x32xf32>, vector<32x64xf32>, vector<16x64xf32> -> vector<16x64xf32>
    %7 = arith.addf %3, %6 : vector<16x64xf32>
    %c0_6 = arith.constant 0 : index
    %c0_7 = arith.constant 0 : index
    %8 = vector.load %arg6[%c0_6, %c0_7] : memref<16x64xf32, #tpu.memory_space<vmem>>, vector<16x64xf32>
    tpu.vector_store %arg6[%c0_6, %c0_7], %7 {strides = array<i32>} : memref<16x64xf32, #tpu.memory_space<vmem>>, vector<16x64xf32>,
    %c0_i32_8 = arith.constant 0 : i32
    %9 = arith.cmpi eq, %arg2, %c0_i32_8 : i32
    %10 = arith.extui %9 : i1 to i32
    %c0_i32_9 = arith.constant 0 : i32
    %11 = arith.cmpi ne, %10, %c0_i32_9 : i32
    scf.if %11 {
      %c0_10 = arith.constant 0 : index
      %c0_11 = arith.constant 0 : index
      %12 = vector.load %arg6[%c0_10, %c0_11] : memref<16x64xf32, #tpu.memory_space<vmem>>, vector<16x64xf32>
      %c0_12 = arith.constant 0 : index
      %c0_13 = arith.constant 0 : index
      %13 = vector.load %arg5[%c0_12, %c0_13] : memref<16x64xf32, #tpu.memory_space<vmem>>, vector<16x64xf32>
      tpu.vector_store %arg5[%c0_12, %c0_13], %12 {strides = array<i32>} : memref<16x64xf32, #tpu.memory_space<vmem>>, vector<16x64xf32>,
    } else {
    }
    return
  }
  func.func @transform_0(%arg0: i32, %arg1: i32, %arg2: i32) -> (i32, i32) {
    %c0_i32 = arith.constant 0 : i32
    return %arg0, %arg2 : i32, i32
  }
  func.func @transform_1(%arg0: i32, %arg1: i32, %arg2: i32) -> (i32, i32) {
    %c0_i32 = arith.constant 0 : i32
    return %arg2, %arg1 : i32, i32
  }
  func.func @transform_2(%arg0: i32, %arg1: i32, %arg2: i32) -> (i32, i32) {
    %c0_i32 = arith.constant 0 : i32
    return %arg0, %arg1 : i32, i32
  }
}

</mosaic_0001>

<bundles_post_ra>
// kernel: tpu_custom_call.1
= control target key start
LH: loop header
LB: loop body
LE: loop exit
PB: predicated region body
PF: predicated region fallthrough
CT: control target
= control target key end

     0   :  { %7 = vsyncpa [#allocation4], 0  ;;  %s344_s0 = inlined_call_operand.hbm [shape: f32[16,32], index: 0, kind: input, shape index: {}]   ;;  %s345_s1 = inlined_call_operand.hbm [shape: f32[32,64], index: 1, kind: input, shape index: {}]   ;;  %s346_s2 = inlined_call_operand.hbm [shape: f32[16,64], index: 2, kind: output, shape index: {}]  }
   0x1   :  { %8 = vsyncpa [#allocation7], 0 }
   0x2   :  { %9 = vsyncpa [#allocation5], 0  ;;  %s272_s9 = smov [#allocation3]   ;;  %s200_s13 = scalar_lea.hbm %s344_s0, 256 }
   0x3   :  { %s15_s10 = sshll.u32 %s272_s9, 4  ;;  %p201_p0 = scmp.ne.s32.totalorder %s344_s0, %s200_s13  ;;  %s16_s10 = int_to_ptr.vmem [resolvable:$true] %s15_s10 }
   0x4   :  { %p204_p1 = scmp.lt.u32.totalorder %s200_s13, %s344_s0 }
   0x6   :  { %p206_p2 = pnand %p204_p1, %p201_p0 }
   0x8   :  { %209 = shalt.err (!%p206_p2)
}
   0x9   :  { %s210_s18 = scalar_lea.vmem %s16_s10, 256  ;;  %p215_p4 = scmp.lt.s32.totalorder %s16_s10, %s16_s10 }
   0xa   :  { %p211_p3 = scmp.ne.s32.totalorder %s16_s10, %s210_s18  ;;  %p216_p5 = scmp.lt.s32.totalorder %s210_s18, %s210_s18 }
   0xc   :  { %p217_p6 = por %p216_p5, %p215_p4 }
   0xe   :  { %p218_p7 = pnand %p217_p6, %p211_p3 }
  0x10   :  { %221 = shalt.err (!%p218_p7)
}
  0x11   :  { %s273_s19 = smov 128   ;;  %s274_s20 = smov 8  }
  0x12   :  { %21 = dma.hbm_to_vmem [thread:$0]  %s344_s0, 256, %s16_s10, [#allocation4], %s273_s19, %s273_s19, %s274_s20  }
  0x13   :  { %s275_s23 = smov [#allocation6]   ;;  %s222_s27 = scalar_lea.hbm %s345_s1, 512 }
  0x14   :  { %s27_s24 = sshll.u32 %s275_s23, 4  ;;  %p223_p8 = scmp.ne.s32.totalorder %s345_s1, %s222_s27  ;;  %s28_s24 = int_to_ptr.vmem [resolvable:$true] %s27_s24 }
  0x15   :  { %p226_p9 = scmp.lt.u32.totalorder %s222_s27, %s345_s1 }
  0x17   :  { %p228_p10 = pnand %p226_p9, %p223_p8 }
  0x19   :  { %231 = shalt.err (!%p228_p10)
}
  0x1a   :  { %s232_s4 = scalar_lea.vmem %s28_s24, 512  ;;  %p237_p12 = scmp.lt.s32.totalorder %s28_s24, %s28_s24 }
  0x1b   :  { %p233_p11 = scmp.ne.s32.totalorder %s28_s24, %s232_s4  ;;  %p238_p13 = scmp.lt.s32.totalorder %s232_s4, %s232_s4 }
  0x1d   :  { %p239_p0 = por %p238_p13, %p237_p12 }
  0x1f   :  { %p240_p1 = pnand %p239_p0, %p233_p11 }
  0x21   :  { %243 = shalt.err (!%p240_p1)
}
  0x22   :  { %33 = dma.hbm_to_vmem [thread:$0]  %s345_s1, 512, %s28_s24, [#allocation7], %s273_s19, %s273_s19, %s274_s20  }
  0x23   :  { %266 = dma.done.wait [#allocation4], 256  }
  0x24   :  { %267 = vsyncadd [#allocation4], 4294967040 }
  0x25   :  { %268 = dma.done.wait [#allocation7], 512  }
  0x26   :  { %269 = vsyncadd [#allocation7], 4294966784  ;;  %vm44_vm0 = vcmask 523264   ;;  %v276_v0 = vmov 0.0   ;;  %vm55_vm1 = vcmask 261120   ;;  %v51_v1 = vld [vmem:[#allocation6] sm:$0xff] }
  0x27   :  { %46 = vst.msk [vmem:[#allocation2 + $0x8] sm:$0xff] %vm44_vm0, %v276_v0  ;;  %45 = vst.msk [vmem:[#allocation2] sm:$0xff] %vm44_vm0, %v276_v0  ;;  %v52_v2 = vld [vmem:[#allocation6 + $0x8] sm:$0xff]  ;;  %v53_v3 = vld [vmem:[#allocation6 + $0x10] sm:$0xff]  ;;  %s277_s1 = smov [#allocation8]  }
  0x28   :  { %v186_v4 = vpack.c.bf16 %v52_v2, %v51_v1  ;;  %v54_v5 = vld [vmem:[#allocation6 + $0x18] sm:$0xff]  ;;  %v49_v6 = vld [vmem:[#allocation3] sm:$0xff]  ;;  %s154_s6 = sshll.u32 %s277_s1, 4  ;;  %s155_s6 = int_to_ptr.vmem [resolvable:$true] %s154_s6 }
  0x29   :  { %v190_v7 = vpack.c.bf16 %v54_v5, %v53_v3  ;;  %183 = vmatprep.mubr.msk.f32.mxu0 %vm55_vm1, %v49_v6  ;;  %v50_v8 = vld [vmem:[#allocation3 + $0x8] sm:$0xff]  ;;  %s244_s7 = scalar_lea.vmem %s155_s6, 256  ;;  %p249_p3 = scmp.lt.s32.totalorder %s155_s6, %s155_s6 }
  0x2a   :  { %187 = vmatprep.subr.bf16.mxu0 %v186_v4  ;;  %p245_p2 = scmp.ne.s32.totalorder %s155_s6, %s244_s7  ;;  %p250_p4 = scmp.lt.s32.totalorder %s244_s7, %s244_s7 }
  0x2b   :  { %189 = vmatpush3.bf16.msra.mxu0 %v186_v4 }
  0x2c   :  { %191 = vmatprep.subr.bf16.mxu0 %v190_v7  ;;  %p251_p5 = por %p250_p4, %p249_p3 }
  0x2e   :  { %v48_v9 = vld [vmem:[#allocation2 + $0x8] sm:$0xff]  ;;  %v47_v10 = vld [vmem:[#allocation2] sm:$0xff]  ;;  %p252_p6 = pnand %p251_p5, %p245_p2 }
  0x2f   :  { %193 = vmatpush3.bf16.msra.mxu0 %v190_v7 }
  0x32   :  { %184 = vmatmul.mubr.msk.f32.vlgmr.msra.gmra.mrb[0].mxu0 %vm55_vm1, %v50_v8 }
 0x105   :  { %v185_v11 = vpop.f32.mrb[0].mxu0 }
 0x106   :  { %v138_v12 = vadd.f32 %v185_v11, %v48_v9  ;;  %v128_v13 = vpop.f32.mrb[1].mxu0 }
 0x107   :  { %v137_v14 = vadd.f32 %v128_v13, %v47_v10 }
 0x108   :  { %141 = vst.msk [vmem:[#allocation2 + $0x8] sm:$0xff] %vm44_vm0, %v138_v12 }
 0x109   :  { %140 = vst.msk [vmem:[#allocation2] sm:$0xff] %vm44_vm0, %v137_v14 }
 0x10f   :  { %v146_v15 = vld [vmem:[#allocation2 + $0x8] sm:$0xff] }
 0x110   :  { %v145_v16 = vld [vmem:[#allocation2] sm:$0xff]  ;;  %148 = vst.msk [vmem:[#allocation8 + $0x8] sm:$0xff] %vm44_vm0, %v146_v15 }
 0x111   :  { %147 = vst.msk [vmem:[#allocation8] sm:$0xff] %vm44_vm0, %v145_v16 }
 0x112   :  { %255 = shalt.err (!%p252_p6)
}
 0x113   :  { %s256_s10 = scalar_lea.hbm %s346_s2, 256 }
 0x114   :  { %p257_p7 = scmp.ne.s32.totalorder %s346_s2, %s256_s10  ;;  %p260_p8 = scmp.lt.u32.totalorder %s256_s10, %s346_s2 }
 0x116   :  { %p262_p9 = pnand %p260_p8, %p257_p7 }
 0x118   :  { %265 = shalt.err (!%p262_p9)
}
 0x119   :  { %160 = dma.vmem_to_hbm [thread:$0]  %s155_s6, 256, %s346_s2, [#allocation5], %s273_s19, %s273_s19, %s274_s20  }
 0x11a   :  { %270 = dma.done.wait [#allocation5], 256  }
 0x11b   :  { %271 = vsyncadd [#allocation5], 4294967040 }
 0x11c   :  { %164 = vsyncpa [#allocation4], 1 }
 0x11d   :  { %165 = vsyncpa [#allocation7], 1 }
 0x11e   :  { %166 = vsyncpa [#allocation5], 1 }

</bundles_post_ra>
